<compile_context>
chip_gen: v5e
topology: v5e:2x2
jax: 0.10.0
libtpu: 0.0.40
codegen_flags: <defaults>
</compile_context>

<pallas_src>
import jax
import jax.numpy as jnp
import numpy as np
from jax.experimental import pallas as pl
from jax.experimental.pallas import tpu as pltpu


def _make_basic_block_kernel(img_h):
    """Returns the fused kernel, closed over the static per-image row count H."""

    def kernel(x_ref, w1_ref, b1_ref, w2_ref, b2_ref, o_ref):
        # x_ref : (M, W*Cin) f32    M = (#images in this block) * H, channel fastest
        # w1_ref: (3, W*Cin, W*C1) bf16  banded conv1 weights (BN1 scale folded in)
        # b1_ref: (1, W*C1)  f32         folded BN1 bias, tiled over W
        # w2_ref: (3, W*C1, W*C1) bf16   banded conv2 weights (BN2 scale folded in)
        # b2_ref: (1, W*C1)  f32
        # o_ref : (M, W*C1)
        x = x_ref[...].astype(jnp.float32)
        m, k = x.shape

        # Per-image halo masks, computed once (stage 2 has the same shape since
        # Cin == C1 on the identity-shortcut path).  Hoisted: JAX does not CSE
        # broadcast_in_dim.
        row = jax.lax.broadcasted_iota(jnp.int32, (m, k), 0) % img_h
        top = row == 0              # first row of each image
        bot = row == (img_h - 1)    # last row of each image

        def conv3x3(a, w_ref):
            # 3x3 conv as three banded matmuls.  The ky=0 / ky=2 operands are
            # built in vregs: sublane roll (XLU slot, idle otherwise) + halo
            # mask (one VPU select) -- no VMEM scratch store->reload.
            up = jnp.where(top, 0.0, pltpu.roll(a, 1, axis=0))        # row i <- a[i-1]
            dn = jnp.where(bot, 0.0, pltpu.roll(a, m - 1, axis=0))    # row i <- a[i+1]
            acc = jnp.dot(up.astype(jnp.bfloat16), w_ref[0],
                          preferred_element_type=jnp.float32)
            acc += jnp.dot(a.astype(jnp.bfloat16), w_ref[1],
                           preferred_element_type=jnp.float32)
            acc += jnp.dot(dn.astype(jnp.bfloat16), w_ref[2],
                           preferred_element_type=jnp.float32)
            return acc

        # Stage 1: conv1 + folded BN1 + ReLU (result stays in vregs).
        h1 = jnp.maximum(conv3x3(x, w1_ref) + b1_ref[...], 0.0)
        # Stage 2: conv2 + folded BN2 + identity shortcut + ReLU.
        out = conv3x3(h1, w2_ref) + b2_ref[...] + x
        o_ref[...] = jnp.maximum(out, 0.0).astype(o_ref.dtype)

    return kernel


def _folded_bn(gamma, beta, mean, var, eps):
    scale = gamma / jnp.sqrt(var + eps)
    bias = beta - mean * scale
    return scale, bias


def _banded_conv_weights(w_oihw, scale, W):
    """Torch (Cout, Cin, 3, 3) weights * per-Cout BN scale -> 3 banded matrices
    of shape (W*Cin, W*Cout), one per ky tap.  SAME (padding=1) W-axis padding
    is folded into the band structure (out-of-range kx taps get zero weight)."""
    w = jnp.transpose(w_oihw, (2, 3, 1, 0)).astype(jnp.float32)   # (3,3,Cin,Cout)
    w = w * scale.astype(jnp.float32)                             # fold BN scale per Cout
    Cin, Cout = w.shape[2], w.shape[3]
    wi = jnp.arange(W)
    # sel[kx, w_in, w_out] = 1 iff w_in == w_out + kx - 1
    sel = (wi[None, :, None] ==
           (wi[None, None, :] + jnp.arange(3)[:, None, None] - 1)).astype(jnp.float32)
    mats = []
    for ky in range(3):
        m = jnp.einsum('kio,kab->aibo', w[ky], sel)               # (W, Cin, W, Cout)
        mats.append(m.reshape(W * Cin, W * Cout))
    return jnp.stack(mats)                                        # (3, W*Cin, W*Cout)


def basic_block_forward(x_nchw, params, eps=1e-5):
    """BasicBlock.forward: relu(bn2(conv2(relu(bn1(conv1(x))))) + x)."""
    N, Cin, H, W = x_nchw.shape
    C1 = params["conv1_w"].shape[0]
    assert params["conv1_w"].shape == (C1, Cin, 3, 3)
    assert params["conv2_w"].shape == (C1, C1, 3, 3)
    assert Cin == C1, "projection shortcut (stride!=1 or channel change) not implemented"

    s1, b1 = _folded_bn(params["bn1_gamma"], params["bn1_beta"],
                        params["bn1_mean"], params["bn1_var"], eps)
    s2, b2 = _folded_bn(params["bn2_gamma"], params["bn2_beta"],
                        params["bn2_mean"], params["bn2_var"], eps)

    # bf16 MXU operands (f32 accumulation + f32 epilogue happen in-kernel).
    w1 = _banded_conv_weights(params["conv1_w"], s1, W).astype(jnp.bfloat16)
    w2 = _banded_conv_weights(params["conv2_w"], s2, W).astype(jnp.bfloat16)
    b1_row = jnp.tile(b1.astype(jnp.float32), W).reshape(1, W * C1)
    b2_row = jnp.tile(b2.astype(jnp.float32), W).reshape(1, W * C1)

    # NCHW -> lane-merged (N*H, W*C) rows (channel fastest); batch folded into M.
    x_rows = jnp.transpose(x_nchw, (0, 2, 3, 1)).reshape(N * H, W * Cin)

    # Chip-adaptive grid: 1 step on single-TC chips (v5e/v6e) to avoid
    # per-grid-step overhead; 2 parallel steps on v7x so both TCs get work.
    try:
        kind = jax.devices()[0].device_kind.lower()
    except Exception:
        kind = ""
    n_blocks = 2 if ("v7" in kind and N >= 2 and N % 2 == 0) else 1
    bh = (N // n_blocks) * H                     # rows per grid step

    out_rows = pl.pallas_call(
        _make_basic_block_kernel(H),
        out_shape=jax.ShapeDtypeStruct((N * H, W * C1), x_nchw.dtype),
        grid_spec=pltpu.PrefetchScalarGridSpec(
            num_scalar_prefetch=0,
            grid=(n_blocks,),
            in_specs=[
                pl.BlockSpec((bh, W * Cin), lambda i: (i, 0)),
                # Constant-index weights/biases: fetched once across the grid.
                pl.BlockSpec((3, W * Cin, W * C1), lambda i: (0, 0, 0)),
                pl.BlockSpec((1, W * C1), lambda i: (0, 0)),
                pl.BlockSpec((3, W * C1, W * C1), lambda i: (0, 0, 0)),
                pl.BlockSpec((1, W * C1), lambda i: (0, 0)),
            ],
            out_specs=pl.BlockSpec((bh, W * C1), lambda i: (i, 0)),
        ),
        compiler_params=pltpu.CompilerParams(
            dimension_semantics=("parallel",)),
    )(x_rows, w1, b1_row, w2, b2_row)

    return jnp.transpose(out_rows.reshape(N, H, W, C1), (0, 3, 1, 2))   # -> NCHW


def _reference_block(x_nchw, params, eps=1e-5):
    """Pure-JAX f32 reference for correctness checking."""
    dn = ("NHWC", "HWIO", "NHWC")
    x = jnp.transpose(x_nchw, (0, 2, 3, 1))
    w1 = jnp.transpose(params["conv1_w"], (2, 3, 1, 0))
    w2 = jnp.transpose(params["conv2_w"], (2, 3, 1, 0))

    def bn(y, g, b, m, v):
        return (y - m) / jnp.sqrt(v + eps) * g + b

    c1 = jax.lax.conv_general_dilated(x, w1, (1, 1), "SAME", dimension_numbers=dn)
    o1 = jax.nn.relu(bn(c1, params["bn1_gamma"], params["bn1_beta"],
                        params["bn1_mean"], params["bn1_var"]))
    c2 = jax.lax.conv_general_dilated(o1, w2, (1, 1), "SAME", dimension_numbers=dn)
    o2 = bn(c2, params["bn2_gamma"], params["bn2_beta"],
            params["bn2_mean"], params["bn2_var"]) + x
    return jnp.transpose(jax.nn.relu(o2), (0, 3, 1, 2))


if __name__ == "__main__":
    key = jax.random.PRNGKey(0)
    N, C, H, W = 2, 4, 16, 16
    planes = 4  # stride=1, in_planes == planes -> identity shortcut
    ks = jax.random.split(key, 7)

    x = jax.random.normal(ks[0], (N, C, H, W), jnp.float32)
    params = {
        # PyTorch-style conv weights: (out_ch, in_ch, kH, kW), no bias.
        "conv1_w": 0.1 * jax.random.normal(ks[1], (planes, C, 3, 3), jnp.float32),
        "conv2_w": 0.1 * jax.random.normal(ks[2], (planes, planes, 3, 3), jnp.float32),
        "bn1_gamma": 1.0 + 0.1 * jax.random.normal(ks[3], (planes,), jnp.float32),
        "bn1_beta": 0.1 * jax.random.normal(ks[4], (planes,), jnp.float32),
        "bn1_mean": jnp.zeros((planes,), jnp.float32),
        "bn1_var": jnp.ones((planes,), jnp.float32),
        "bn2_gamma": 1.0 + 0.1 * jax.random.normal(ks[5], (planes,), jnp.float32),
        "bn2_beta": 0.1 * jax.random.normal(ks[6], (planes,), jnp.float32),
        "bn2_mean": jnp.zeros((planes,), jnp.float32),
        "bn2_var": jnp.ones((planes,), jnp.float32),
    }

    out = jax.block_until_ready(basic_block_forward(x, params))
    ref = jax.block_until_ready(_reference_block(x, params))

    # Tolerance relaxed vs the f32 reference because matmul operands are bf16
    # (f32 accumulation / epilogue); estimated worst-case abs error ~2e-2.
    np.testing.assert_allclose(np.asarray(out), np.asarray(ref),
                               rtol=5e-2, atol=5e-2)
    assert out.shape == (N, planes, H, W)
    print("KERNEL_OK")
</pallas_src>

<mosaic_0001>
module attributes {stable_mosaic.version = 11 : i64} {
  func.func @kernel(%arg0: i32, %arg1: memref<32x64xf32, #tpu.memory_space<vmem>>, %arg2: memref<3x64x64xbf16, #tpu.memory_space<vmem>>, %arg3: memref<1x64xf32, #tpu.memory_space<vmem>>, %arg4: memref<3x64x64xbf16, #tpu.memory_space<vmem>>, %arg5: memref<1x64xf32, #tpu.memory_space<vmem>>, %arg6: memref<32x64xf32, #tpu.memory_space<vmem>>) attributes {dimension_semantics = [#tpu.dimension_semantics<parallel>], iteration_bounds = array<i64: 1>, scalar_prefetch = 0 : i64, scratch_operands = 0 : i64, tpu.core_type = #tpu.core_type<tc>, window_params = [{transform_indices = @transform_0, window_bounds = array<i64: 32, 64>}, {pipeline_mode = #tpu.pipeline_mode<synchronous>, transform_indices = @transform_1, window_bounds = array<i64: 3, 64, 64>}, {pipeline_mode = #tpu.pipeline_mode<synchronous>, transform_indices = @transform_2, window_bounds = array<i64: 1, 64>}, {pipeline_mode = #tpu.pipeline_mode<synchronous>, transform_indices = @transform_3, window_bounds = array<i64: 3, 64, 64>}, {pipeline_mode = #tpu.pipeline_mode<synchronous>, transform_indices = @transform_4, window_bounds = array<i64: 1, 64>}, {transform_indices = @transform_5, window_bounds = array<i64: 32, 64>}]} {
    %c0 = arith.constant 0 : index
    %c0_0 = arith.constant 0 : index
    %0 = vector.load %arg1[%c0, %c0_0] : memref<32x64xf32, #tpu.memory_space<vmem>>, vector<32x64xf32>
    %1 = tpu.iota {dimensions = array<i32: 0>} : vector<32x64xi32>
    %c16_i32 = arith.constant 16 : i32
    %c0_i32 = arith.constant 0 : i32
    %2 = arith.cmpi eq, %c16_i32, %c0_i32 : i32
    %c1_i32 = arith.constant 1 : i32
    %3 = arith.select %2, %c1_i32, %c16_i32 : i32
    %4 = vector.broadcast %3 : i32 to vector<32x64xi32>
    %5 = arith.remsi %1, %4 : vector<32x64xi32>
    %c0_i32_1 = arith.constant 0 : i32
    %6 = vector.broadcast %c0_i32_1 : i32 to vector<32x64xi32>
    %7 = arith.cmpi ne, %5, %6 : vector<32x64xi32>
    %c0_i32_2 = arith.constant 0 : i32
    %8 = vector.broadcast %c0_i32_2 : i32 to vector<32x64xi32>
    %9 = arith.cmpi slt, %5, %8 : vector<32x64xi32>
    %c0_i32_3 = arith.constant 0 : i32
    %10 = arith.cmpi slt, %3, %c0_i32_3 : i32
    %11 = vector.broadcast %10 : i1 to vector<32x64xi1>
    %12 = vector.broadcast %11 : vector<32x64xi1> to vector<32x64xi1>
    %13 = arith.xori %9, %12 : vector<32x64xi1>
    %14 = arith.andi %13, %7 : vector<32x64xi1>
    %15 = vector.broadcast %3 : i32 to vector<32x64xi32>
    %16 = arith.addi %5, %15 : vector<32x64xi32>
    %17 = arith.select %14, %16, %5 : vector<32x64xi1>, vector<32x64xi32>
    %c0_i32_4 = arith.constant 0 : i32
    %18 = vector.broadcast %c0_i32_4 : i32 to vector<32x64xi32>
    %19 = arith.cmpi eq, %17, %18 : vector<32x64xi32>
    %c15_i32 = arith.constant 15 : i32
    %20 = vector.broadcast %c15_i32 : i32 to vector<32x64xi32>
    %21 = arith.cmpi eq, %17, %20 : vector<32x64xi32>
    %c1_i32_5 = arith.constant 1 : i32
    %22 = tpu.dynamic_rotate %0 by %c1_i32_5 dim 0 : vector<32x64xf32>, i32 -> vector<32x64xf32>
    %cst = arith.constant 0.000000e+00 : f32
    %23 = vector.broadcast %cst : f32 to vector<32x64xf32>
    %24 = arith.select %19, %23, %22 : vector<32x64xi1>, vector<32x64xf32>
    %c31_i32 = arith.constant 31 : i32
    %25 = tpu.dynamic_rotate %0 by %c31_i32 dim 0 : vector<32x64xf32>, i32 -> vector<32x64xf32>
    %cst_6 = arith.constant 0.000000e+00 : f32
    %26 = vector.broadcast %cst_6 : f32 to vector<32x64xf32>
    %27 = arith.select %21, %26, %25 : vector<32x64xi1>, vector<32x64xf32>
    %28 = arith.truncf %24 : vector<32x64xf32> to vector<32x64xbf16>
    %c0_7 = arith.constant 0 : index
    %c0_8 = arith.constant 0 : index
    %c0_9 = arith.constant 0 : index
    %29 = vector.load %arg2[%c0_7, %c0_8, %c0_9] : memref<3x64x64xbf16, #tpu.memory_space<vmem>>, vector<1x64x64xbf16>
    %30 = vector.shape_cast %29 : vector<1x64x64xbf16> to vector<64x64xbf16>
    %cst_10 = arith.constant dense<0.000000e+00> : vector<32x64xf32>
    %31 = tpu.matmul %28, %30, %cst_10 {dimension_numbers = #tpu.dot_dimension_numbers<[1], [0], [0], [1], [0, 0, 1, 1], [], []>} : vector<32x64xbf16>, vector<64x64xbf16>, vector<32x64xf32> -> vector<32x64xf32>
    %32 = arith.truncf %0 : vector<32x64xf32> to vector<32x64xbf16>
    %c1 = arith.constant 1 : index
    %c0_11 = arith.constant 0 : index
    %c0_12 = arith.constant 0 : index
    %33 = vector.load %arg2[%c1, %c0_11, %c0_12] : memref<3x64x64xbf16, #tpu.memory_space<vmem>>, vector<1x64x64xbf16>
    %34 = vector.shape_cast %33 : vector<1x64x64xbf16> to vector<64x64xbf16>
    %cst_13 = arith.constant dense<0.000000e+00> : vector<32x64xf32>
    %35 = tpu.matmul %32, %34, %cst_13 {dimension_numbers = #tpu.dot_dimension_numbers<[1], [0], [0], [1], [0, 0, 1, 1], [], []>} : vector<32x64xbf16>, vector<64x64xbf16>, vector<32x64xf32> -> vector<32x64xf32>
    %36 = arith.addf %31, %35 : vector<32x64xf32>
    %37 = arith.truncf %27 : vector<32x64xf32> to vector<32x64xbf16>
    %c2 = arith.constant 2 : index
    %c0_14 = arith.constant 0 : index
    %c0_15 = arith.constant 0 : index
    %38 = vector.load %arg2[%c2, %c0_14, %c0_15] : memref<3x64x64xbf16, #tpu.memory_space<vmem>>, vector<1x64x64xbf16>
    %39 = vector.shape_cast %38 : vector<1x64x64xbf16> to vector<64x64xbf16>
    %cst_16 = arith.constant dense<0.000000e+00> : vector<32x64xf32>
    %40 = tpu.matmul %37, %39, %cst_16 {dimension_numbers = #tpu.dot_dimension_numbers<[1], [0], [0], [1], [0, 0, 1, 1], [], []>} : vector<32x64xbf16>, vector<64x64xbf16>, vector<32x64xf32> -> vector<32x64xf32>
    %41 = arith.addf %36, %40 : vector<32x64xf32>
    %c0_17 = arith.constant 0 : index
    %c0_18 = arith.constant 0 : index
    %42 = vector.load %arg3[%c0_17, %c0_18] : memref<1x64xf32, #tpu.memory_space<vmem>>, vector<1x64xf32>
    %43 = vector.broadcast %42 : vector<1x64xf32> to vector<32x64xf32>
    %44 = arith.addf %41, %43 : vector<32x64xf32>
    %cst_19 = arith.constant 0.000000e+00 : f32
    %45 = vector.broadcast %cst_19 : f32 to vector<32x64xf32>
    %46 = arith.maximumf %44, %45 : vector<32x64xf32>
    %c1_i32_20 = arith.constant 1 : i32
    %47 = tpu.dynamic_rotate %46 by %c1_i32_20 dim 0 : vector<32x64xf32>, i32 -> vector<32x64xf32>
    %cst_21 = arith.constant 0.000000e+00 : f32
    %48 = vector.broadcast %cst_21 : f32 to vector<32x64xf32>
    %49 = arith.select %19, %48, %47 : vector<32x64xi1>, vector<32x64xf32>
    %c31_i32_22 = arith.constant 31 : i32
    %50 = tpu.dynamic_rotate %46 by %c31_i32_22 dim 0 : vector<32x64xf32>, i32 -> vector<32x64xf32>
    %cst_23 = arith.constant 0.000000e+00 : f32
    %51 = vector.broadcast %cst_23 : f32 to vector<32x64xf32>
    %52 = arith.select %21, %51, %50 : vector<32x64xi1>, vector<32x64xf32>
    %53 = arith.truncf %49 : vector<32x64xf32> to vector<32x64xbf16>
    %c0_24 = arith.constant 0 : index
    %c0_25 = arith.constant 0 : index
    %c0_26 = arith.constant 0 : index
    %54 = vector.load %arg4[%c0_24, %c0_25, %c0_26] : memref<3x64x64xbf16, #tpu.memory_space<vmem>>, vector<1x64x64xbf16>
    %55 = vector.shape_cast %54 : vector<1x64x64xbf16> to vector<64x64xbf16>
    %cst_27 = arith.constant dense<0.000000e+00> : vector<32x64xf32>
    %56 = tpu.matmul %53, %55, %cst_27 {dimension_numbers = #tpu.dot_dimension_numbers<[1], [0], [0], [1], [0, 0, 1, 1], [], []>} : vector<32x64xbf16>, vector<64x64xbf16>, vector<32x64xf32> -> vector<32x64xf32>
    %57 = arith.truncf %46 : vector<32x64xf32> to vector<32x64xbf16>
    %c1_28 = arith.constant 1 : index
    %c0_29 = arith.constant 0 : index
    %c0_30 = arith.constant 0 : index
    %58 = vector.load %arg4[%c1_28, %c0_29, %c0_30] : memref<3x64x64xbf16, #tpu.memory_space<vmem>>, vector<1x64x64xbf16>
    %59 = vector.shape_cast %58 : vector<1x64x64xbf16> to vector<64x64xbf16>
    %cst_31 = arith.constant dense<0.000000e+00> : vector<32x64xf32>
    %60 = tpu.matmul %57, %59, %cst_31 {dimension_numbers = #tpu.dot_dimension_numbers<[1], [0], [0], [1], [0, 0, 1, 1], [], []>} : vector<32x64xbf16>, vector<64x64xbf16>, vector<32x64xf32> -> vector<32x64xf32>
    %61 = arith.addf %56, %60 : vector<32x64xf32>
    %62 = arith.truncf %52 : vector<32x64xf32> to vector<32x64xbf16>
    %c2_32 = arith.constant 2 : index
    %c0_33 = arith.constant 0 : index
    %c0_34 = arith.constant 0 : index
    %63 = vector.load %arg4[%c2_32, %c0_33, %c0_34] : memref<3x64x64xbf16, #tpu.memory_space<vmem>>, vector<1x64x64xbf16>
    %64 = vector.shape_cast %63 : vector<1x64x64xbf16> to vector<64x64xbf16>
    %cst_35 = arith.constant dense<0.000000e+00> : vector<32x64xf32>
    %65 = tpu.matmul %62, %64, %cst_35 {dimension_numbers = #tpu.dot_dimension_numbers<[1], [0], [0], [1], [0, 0, 1, 1], [], []>} : vector<32x64xbf16>, vector<64x64xbf16>, vector<32x64xf32> -> vector<32x64xf32>
    %66 = arith.addf %61, %65 : vector<32x64xf32>
    %c0_36 = arith.constant 0 : index
    %c0_37 = arith.constant 0 : index
    %67 = vector.load %arg5[%c0_36, %c0_37] : memref<1x64xf32, #tpu.memory_space<vmem>>, vector<1x64xf32>
    %68 = vector.broadcast %67 : vector<1x64xf32> to vector<32x64xf32>
    %69 = arith.addf %66, %68 : vector<32x64xf32>
    %70 = arith.addf %69, %0 : vector<32x64xf32>
    %cst_38 = arith.constant 0.000000e+00 : f32
    %71 = vector.broadcast %cst_38 : f32 to vector<32x64xf32>
    %72 = arith.maximumf %70, %71 : vector<32x64xf32>
    %c0_39 = arith.constant 0 : index
    %c0_40 = arith.constant 0 : index
    %73 = vector.load %arg6[%c0_39, %c0_40] : memref<32x64xf32, #tpu.memory_space<vmem>>, vector<32x64xf32>
    tpu.vector_store %arg6[%c0_39, %c0_40], %72 {strides = array<i32>} : memref<32x64xf32, #tpu.memory_space<vmem>>, vector<32x64xf32>,
    return
  }
  func.func @transform_0(%arg0: i32) -> (i32, i32) {
    %c0_i32 = arith.constant 0 : i32
    %c0_i32_0 = arith.constant 0 : i32
    return %arg0, %c0_i32 : i32, i32
  }
  func.func @transform_1(%arg0: i32) -> (i32, i32, i32) {
    %c0_i32 = arith.constant 0 : i32
    %c0_i32_0 = arith.constant 0 : i32
    %c0_i32_1 = arith.constant 0 : i32
    %c0_i32_2 = arith.constant 0 : i32
    return %c0_i32, %c0_i32_0, %c0_i32_1 : i32, i32, i32
  }
  func.func @transform_2(%arg0: i32) -> (i32, i32) {
    %c0_i32 = arith.constant 0 : i32
    %c0_i32_0 = arith.constant 0 : i32
    %c0_i32_1 = arith.constant 0 : i32
    return %c0_i32, %c0_i32_0 : i32, i32
  }
  func.func @transform_3(%arg0: i32) -> (i32, i32, i32) {
    %c0_i32 = arith.constant 0 : i32
    %c0_i32_0 = arith.constant 0 : i32
    %c0_i32_1 = arith.constant 0 : i32
    %c0_i32_2 = arith.constant 0 : i32
    return %c0_i32, %c0_i32_0, %c0_i32_1 : i32, i32, i32
  }
  func.func @transform_4(%arg0: i32) -> (i32, i32) {
    %c0_i32 = arith.constant 0 : i32
    %c0_i32_0 = arith.constant 0 : i32
    %c0_i32_1 = arith.constant 0 : i32
    return %c0_i32, %c0_i32_0 : i32, i32
  }
  func.func @transform_5(%arg0: i32) -> (i32, i32) {
    %c0_i32 = arith.constant 0 : i32
    %c0_i32_0 = arith.constant 0 : i32
    return %arg0, %c0_i32 : i32, i32
  }
}

</mosaic_0001>

<bundles_post_ra>
// kernel: tpu_custom_call.1
= control target key start
LH: loop header
LB: loop body
LE: loop exit
PB: predicated region body
PF: predicated region fallthrough
CT: control target
= control target key end

     0   :  { %10 = vsyncpa [#allocation3], 0  ;;  %s1029_s0 = inlined_call_operand.hbm [shape: f32[32,64], index: 0, kind: input, shape index: {}]   ;;  %s1030_s1 = inlined_call_operand.hbm [shape: bf16[3,64,64], index: 1, kind: input, shape index: {}]   ;;  %s1031_s2 = inlined_call_operand.vmem [shape: f32[1,64], index: 2, kind: input, shape index: {}]   ;;  %s1032_s3 = inlined_call_operand.hbm [shape: bf16[3,64,64], index: 3, kind: input, shape index: {}]   ;;  %s1033_s4 = inlined_call_operand.vmem [shape: f32[1,64], index: 4, kind: input, shape index: {}]   ;;  %s1034_s5 = inlined_call_operand.hbm [shape: f32[32,64], index: 5, kind: output, shape index: {}]  }
   0x1   :  { %11 = vsyncpa [#allocation6], 0  ;;  %s30_s20 = sshll.u32 %s1030_s1, 4  ;;  %s31_s20 = int_to_ptr.hbm [resolvable:$true] %s30_s20 }
   0x2   :  { %12 = vsyncpa [#allocation4], 0  ;;  %s855_s21 = smov [#allocation5]   ;;  %s17_s25 = sshll.u32 %s1029_s0, 4  ;;  %s18_s25 = int_to_ptr.hbm [resolvable:$true] %s17_s25 }
   0x3   :  { %s32_s22 = sshll.u32 %s855_s21, 4  ;;  %s856_s26 = smov 64   ;;  %s33_s22 = int_to_ptr.vmem [resolvable:$true] %s32_s22 }
   0x4   :  { %s857_s27 = smov 4   ;;  %s858_s28 = smov [#allocation2]  }
   0x5   :  { %38 = dma.hbm_to_vmem [thread:$0]  %s31_s20, 1536, %s33_s22, [#allocation6], %s856_s26, %s856_s26, %s857_s27  }
   0x6   :  { %s19_s29 = sshll.u32 %s858_s28, 4  ;;  %s859_s30 = smov 128   ;;  %s20_s29 = int_to_ptr.vmem [resolvable:$true] %s19_s29 }
   0x7   :  { %s860_s6 = smov 8   ;;  %s45_s8 = sshll.u32 %s1032_s3, 4  ;;  %s46_s8 = int_to_ptr.hbm [resolvable:$true] %s45_s8 }
   0x8   :  { %25 = dma.hbm_to_vmem [thread:$0]  %s18_s25, 512, %s20_s29, [#allocation3], %s859_s30, %s859_s30, %s860_s6  }
   0x9   :  { %s861_s9 = smov [#allocation7]  }
   0xa   :  { %s47_s0 = sshll.u32 %s861_s9, 4  ;;  %s48_s0 = int_to_ptr.vmem [resolvable:$true] %s47_s0 }
   0xb   :  { %53 = dma.hbm_to_vmem [thread:$0]  %s46_s8, 1536, %s48_s0, [#allocation6], %s856_s26, %s856_s26, %s857_s27  }
   0xc   :  { %849 = dma.done.wait [#allocation3], 512  }
   0xd   :  { %850 = vsyncadd [#allocation3], 4294966784 }
   0xe   :  { %851 = dma.done.wait [#allocation6], 3072  }
   0xf   :  { %852 = vsyncadd [#allocation6], 4294964224  ;;  %v73_v0 = vlaneseq  ;;  %v718_v3 = vld [vmem:[#allocation5 + $0x38] sm:$0xff]  ;;  %v717_v5 = vld [vmem:[#allocation5 + $0x30] sm:$0xff]  ;;  %vm205_vm3 = vcmask 523264   ;;  %s589_s15 = sshll.u32 %s1034_s5, 4  ;;  %s590_s15 = int_to_ptr.hbm [resolvable:$true] %s589_s15 }
  0x10   :  { %v714_v4 = vld [vmem:[#allocation5 + $0x18] sm:$0xff]  ;;  %735 = vmatpush.bf16.msra.mxu2 %v718_v3  ;;  %v713_v6 = vld [vmem:[#allocation5 + $0x10] sm:$0xff]  ;;  %v912_v9 = vld [vmem:[#allocation2 + $0x8] sm:$0xff]  ;;  %216 = vmatpush.bf16.msra.mxu0 %v718_v3 }
  0x11   :  { %v905_v1 = vshrl.u32 %v73_v0, 7  ;;  %739 = vmatpush.bf16.msra.mxu3 %v714_v4  ;;  %v908_v7 = vld [vmem:[#allocation2 + $0x10] sm:$0xff]  ;;  %v910_v8 = vld [vmem:[#allocation2 + $0x18] sm:$0xff]  ;;  %265 = vmatpush.bf16.msra.mxu1 %v714_v4  ;;  %v135_v12 = vrot.slane %v912_v9, 7  ;;  %v716_v13 = vld [vmem:[#allocation5 + $0x28] sm:$0xff]  ;;  %v148_v39 = vrot.slane %v912_v9, 1 }
  0x12   :  { %v136_v11 = vrot.slane %v908_v7, 7  ;;  %v712_v15 = vld [vmem:[#allocation5 + $0x8] sm:$0xff]  ;;  %v137_v16 = vrot.slane %v910_v8, 7  ;;  %v919_v17 = vld [vmem:[#allocation2] sm:$0xff]  ;;  %v722_v27 = vld [vmem:[#allocation5 + $0x58] sm:$0xff]  ;;  %v171_v30 = vpack.c.bf16 %v910_v8, %v908_v7  ;;  %v149_v36 = vrot.slane %v908_v7, 1 }
  0x13   :  { %v76_v2 = vadd.s32 16, %v905_v1  ;;  %vm138_vm0 = vcmp.lt.s32.totalorder %v905_v1, 1  ;;  %v82_v14 = vand.u32 15, %v905_v1  ;;  %v134_v20 = vrot.slane %v919_v17, 7  ;;  %v715_v23 = vld [vmem:[#allocation5 + $0x20] sm:$0xff]  ;;  %v721_v33 = vld [vmem:[#allocation5 + $0x50] sm:$0xff] }
  0x14   :  { %736 = vmatpush.bf16.msra.mxu2 %v717_v5  ;;  %v140_v19 = vsel %vm138_vm0, %v135_v12, %v136_v11  ;;  %217 = vmatpush.bf16.msra.mxu0 %v717_v5  ;;  %v711_v24 = vld [vmem:[#allocation5] sm:$0xff]  ;;  %v139_v25 = vsel %vm138_vm0, %v136_v11, %v137_v16  ;;  %v170_v32 = vpack.c.bf16 %v912_v9, %v919_v17  ;;  %v75_v34 = vadd.s32 8, %v905_v1  ;;  %v720_v37 = vld [vmem:[#allocation5 + $0x48] sm:$0xff]  ;;  %v730_v55 = vld [vmem:[#allocation7 + $0x38] sm:$0xff] }
  0x15   :  { %v96_v10 = vand.u32 15, %v76_v2  ;;  %740 = vmatpush.bf16.msra.mxu3 %v713_v6  ;;  %266 = vmatpush.bf16.msra.mxu1 %v713_v6  ;;  %vm928_vm2 = vcmp.eq.s32.totalorder %v82_v14, 0  ;;  %v142_v22 = vsel %vm138_vm0, %v137_v16, %v134_v20  ;;  %v141_v28 = vsel %vm138_vm0, %v134_v20, %v135_v12  ;;  %v719_v41 = vld [vmem:[#allocation5 + $0x40] sm:$0xff]  ;;  %v729_v56 = vld [vmem:[#allocation7 + $0x30] sm:$0xff]  ;;  %v728_v57 = vld [vmem:[#allocation7 + $0x28] sm:$0xff] }
  0x16   :  { %v143_v29 = vsel %vm928_vm2, 0.0, %v142_v22  ;;  %v89_v38 = vand.u32 15, %v75_v34  ;;  %vm151_vm4 = vcmp.lt.s32.totalorder %v905_v1, 7  ;;  %v147_v40 = vrot.slane %v919_v17, 1  ;;  %v727_v58 = vld [vmem:[#allocation7 + $0x20] sm:$0xff]  ;;  %v734_v59 = vld [vmem:[#allocation7 + $0x58] sm:$0xff] }
  0x17   :  { %vm921_vm1 = vcmp.eq.s32.totalorder %v96_v10, 0  ;;  %v160_v35 = vpack.c.bf16 %v141_v28, %v143_v29  ;;  %v153_v43 = vsel %vm151_vm4, %v148_v39, %v149_v36  ;;  %v77_v47 = vadd.s32 24, %v905_v1  ;;  %v733_v61 = vld [vmem:[#allocation7 + $0x50] sm:$0xff]  ;;  %v726_v62 = vld [vmem:[#allocation7 + $0x18] sm:$0xff]  ;;  %v732_v63 = vld [vmem:[#allocation7 + $0x48] sm:$0xff] }
  0x18   :  { %737 = vmatpush.bf16.msra.mxu2 %v716_v13  ;;  %v145_v26 = vsel %vm921_vm1, 0.0, %v140_v19  ;;  %218 = vmatpush.bf16.msra.mxu0 %v716_v13  ;;  %vm955_vm5 = vcmp.eq.s32.totalorder %v89_v38, 15  ;;  %v154_v44 = vsel %vm151_vm4, %v147_v40, %v148_v39  ;;  %v150_v49 = vrot.slane %v910_v8, 1  ;;  %v725_v4 = vld [vmem:[#allocation7 + $0x10] sm:$0xff]  ;;  %v731_v5 = vld [vmem:[#allocation7 + $0x40] sm:$0xff]  ;;  %v724_v6 = vld [vmem:[#allocation7 + $0x8] sm:$0xff] }
  0x19   :  { %741 = vmatpush.bf16.msra.mxu3 %v712_v15  ;;  %267 = vmatpush.bf16.msra.mxu1 %v712_v15  ;;  %v161_v31 = vpack.c.bf16 %v139_v25, %v145_v26  ;;  %v157_v45 = vsel %vm955_vm5, 0.0, %v153_v43  ;;  %v103_v48 = vand.u32 15, %v77_v47  ;;  %v723_v11 = vld [vmem:[#allocation7] sm:$0xff] }
  0x1a   :  { %v280_v46 = vpack.c.bf16 %v157_v45, %v154_v44  ;;  %v155_v51 = vsel %vm151_vm4, %v150_v49, %v147_v40  ;;  %v152_v52 = vsel %vm151_vm4, %v149_v36, %v150_v49  ;;  %v751_v16 = vld [vmem:[%s1031_s2] ss:$0 sm:$0xff] }
  0x1b   :  { %vm968_vm6 = vcmp.eq.s32.totalorder %v103_v48, 15 }
  0x1c   :  { %738 = vmatpush.bf16.msra.mxu2 %v715_v23  ;;  %219 = vmatpush.bf16.msra.mxu0 %v715_v23  ;;  %v159_v53 = vsel %vm968_vm6, 0.0, %v155_v51 }
  0x1d   :  { %742 = vmatpush.bf16.msra.mxu3 %v711_v24  ;;  %268 = vmatpush.bf16.msra.mxu1 %v711_v24  ;;  %v281_v54 = vpack.c.bf16 %v159_v53, %v152_v52 }
  0x1f   :  { %620 = vmatmul.msk.bf16.vlgmr.msra.gmra.mxu2 %vm205_vm3, %v171_v30  ;;  %619 = vmatmul.msk.bf16.vlgmr.msra.gmra.mxu0 %vm205_vm3, %v170_v32 }
  0x20   :  { %325 = vmatpush.bf16.msrb.mxu2 %v722_v27  ;;  %638 = vmatmul.msk.bf16.vlgmr.msra.gmra.mxu3 %vm205_vm3, %v161_v31 }
  0x21   :  { %637 = vmatmul.msk.bf16.vlgmr.msra.gmra.mxu1 %vm205_vm3, %v160_v35  ;;  %435 = vmatpush.bf16.msrb.mxu3 %v730_v55 }
  0x22   :  { %544 = vmatpush.bf16.msrb.mxu1 %v734_v59  ;;  %484 = vmatpush.bf16.msrb.mxu0 %v726_v62 }
  0x24   :  { %326 = vmatpush.bf16.msrb.mxu2 %v721_v33 }
  0x25   :  { %436 = vmatpush.bf16.msrb.mxu3 %v729_v56 }
  0x26   :  { %545 = vmatpush.bf16.msrb.mxu1 %v733_v61  ;;  %485 = vmatpush.bf16.msrb.mxu0 %v725_v4 }
  0x28   :  { %327 = vmatpush.bf16.msrb.mxu2 %v720_v37 }
  0x29   :  { %437 = vmatpush.bf16.msrb.mxu3 %v728_v57 }
  0x2a   :  { %546 = vmatpush.bf16.msrb.mxu1 %v732_v63  ;;  %486 = vmatpush.bf16.msrb.mxu0 %v724_v6 }
  0x2c   :  { %328 = vmatpush.bf16.msrb.mxu2 %v719_v41 }
  0x2d   :  { %438 = vmatpush.bf16.msrb.mxu3 %v727_v58 }
  0x2e   :  { %547 = vmatpush.bf16.msrb.mxu1 %v731_v5  ;;  %487 = vmatpush.bf16.msrb.mxu0 %v723_v11  ;;  %v752_v5 = vld [vmem:[%s1033_s4] ss:$0 sm:$0xff]  ;;  %s862_s4 = smov [#allocation8]  }
  0x2f   :  { %655 = vmatmul.msk.bf16.vlgmr.msrb.gmra.mxu2 %vm205_vm3, %v280_v46  ;;  %s587_s12 = sshll.u32 %s862_s4, 4  ;;  %s588_s12 = int_to_ptr.vmem [resolvable:$true] %s587_s12 }
  0x3f   :  { %656 = vmatmul.msk.bf16.gmra.mxu2 %vm205_vm3, %v281_v54 }
  0x9c   :  { %v221_v0 = vpop.f32.mrf.mxu0 }
  0x9e   :  { %v270_v3 = vpop.f32.mrf.mxu1 }
  0x9f   :  { %v271_v12 = vadd.f32 %v270_v3, %v221_v0 }
  0xa2   :  { %v226_v60 = vpop.f32.mrf.mxu2 }
  0xa3   :  { %v275_v24 = vpop.f32.mrf.mxu3 }
  0xa4   :  { %v223_v13 = vpop.f32.mrf.mxu0  ;;  %v276_v28 = vadd.f32 %v275_v24, %v226_v60 }
  0xa6   :  { %v272_v14 = vpop.f32.mrf.mxu1 }
  0xa7   :  { %v273_v19 = vadd.f32 %v272_v14, %v223_v13 }
  0xaa   :  { %v228_v2 = vpop.f32.mrf.mxu2 }
  0xab   :  { %v277_v33 = vpop.f32.mrf.mxu3 }
  0xac   :  { %v278_v36 = vadd.f32 %v277_v33, %v228_v2 }
  0xb2   :  { %v330_v10 = vpop.f32.mrf.mxu2 }
  0xb3   :  { %v340_v15 = vadd.f32 %v330_v10, %v271_v12 }
  0xb5   :  { %v348_v22 = vadd.f32 %v751_v16, %v340_v15 }
  0xb7   :  { %v352_v26 = vmax.f32 %v348_v22, 0.0 }
  0xb9   :  { %v368_v38 = vrot.slane %v352_v26, 1  ;;  %v356_v49 = vrot.slane %v352_v26, 7 }
  0xba   :  { %v332_v20 = vpop.f32.mrf.mxu2 }
  0xbb   :  { %v341_v23 = vadd.f32 %v332_v20, %v273_v19 }
  0xbd   :  { %v349_v25 = vadd.f32 %v751_v16, %v341_v23 }
  0xbf   :  { %v353_v27 = vmax.f32 %v349_v25, 0.0 }
  0xc1   :  { %v390_v29 = vpack.c.bf16 %v353_v27, %v352_v26  ;;  %v369_v35 = vrot.slane %v353_v27, 1  ;;  %v357_v48 = vrot.slane %v353_v27, 7 }
  0xc2   :  { %v335_v30 = vpop.f32.mrf.mxu2 }
  0xc3   :  { %v342_v31 = vadd.f32 %v335_v30, %v276_v28  ;;  %673 = vmatmul.msk.bf16.vlgmr.msrb.gmra.mxu3 %vm205_vm3, %v390_v29  ;;  %v374_v43 = vsel %vm151_vm4, %v368_v38, %v369_v35  ;;  %v362_v55 = vsel %vm138_vm0, %v356_v49, %v357_v48 }
  0xc5   :  { %v350_v32 = vadd.f32 %v751_v16, %v342_v31 }
  0xc7   :  { %v354_v34 = vmax.f32 %v350_v32, 0.0 }
  0xc9   :  { %v370_v37 = vrot.slane %v354_v34, 1  ;;  %v358_v60 = vrot.slane %v354_v34, 7 }
  0xca   :  { %v337_v39 = vpop.f32.mrf.mxu2 }
  0xcb   :  { %v343_v40 = vadd.f32 %v337_v39, %v278_v36  ;;  %v373_v41 = vsel %vm151_vm4, %v369_v35, %v370_v37  ;;  %v361_v21 = vsel %vm138_vm0, %v357_v48, %v358_v60 }
  0xcc   :  { %v377_v44 = vsel %vm955_vm5, 0.0, %v373_v41  ;;  %v366_v63 = vsel %vm921_vm1, 0.0, %v361_v21 }
  0xcd   :  { %v351_v45 = vadd.f32 %v751_v16, %v343_v40  ;;  %v499_v46 = vpack.c.bf16 %v377_v44, %v374_v43 }
  0xcf   :  { %v355_v47 = vmax.f32 %v351_v45, 0.0  ;;  %709 = vmatmul.msk.bf16.vlgmr.msrb.gmra.mxu1 %vm205_vm3, %v499_v46 }
  0xd1   :  { %v359_v51 = vrot.slane %v355_v47, 7  ;;  %v391_v52 = vpack.c.bf16 %v355_v47, %v354_v34  ;;  %v371_v53 = vrot.slane %v355_v47, 1 }
  0xd3   :  { %674 = vmatmul.msk.bf16.gmra.mxu3 %vm205_vm3, %v391_v52  ;;  %v363_v54 = vsel %vm138_vm0, %v359_v51, %v356_v49  ;;  %v375_v57 = vsel %vm151_vm4, %v371_v53, %v368_v38  ;;  %v372_v58 = vsel %vm151_vm4, %v370_v37, %v371_v53  ;;  %v360_v62 = vsel %vm138_vm0, %v358_v60, %v359_v51 }
  0xd4   :  { %v364_v42 = vsel %vm928_vm2, 0.0, %v363_v54  ;;  %v379_v59 = vsel %vm968_vm6, 0.0, %v375_v57  ;;  %v381_v0 = vpack.c.bf16 %v360_v62, %v366_v63 }
  0xd5   :  { %v380_v56 = vpack.c.bf16 %v362_v55, %v364_v42  ;;  %v500_v61 = vpack.c.bf16 %v379_v59, %v372_v58 }
  0xd7   :  { %691 = vmatmul.msk.bf16.vlgmr.msrb.gmra.mxu0 %vm205_vm3, %v380_v56 }
  0xdf   :  { %710 = vmatmul.msk.bf16.gmra.mxu1 %vm205_vm3, %v500_v61 }
  0xe7   :  { %692 = vmatmul.msk.bf16.gmra.mxu0 %vm205_vm3, %v381_v0 }
 0x146   :  { %v440_v2 = vpop.f32.mrf.mxu3 }
 0x14c   :  { %v549_v3 = vpop.f32.mrf.mxu1 }
 0x14e   :  { %v442_v10 = vpop.f32.mrf.mxu3 }
 0x154   :  { %v489_v50 = vpop.f32.mrf.mxu0  ;;  %v551_v12 = vpop.f32.mrf.mxu1 }
 0x155   :  { %v490_v4 = vadd.f32 %v489_v50, %v440_v2 }
 0x156   :  { %v445_v19 = vpop.f32.mrf.mxu3 }
 0x157   :  { %v559_v6 = vadd.f32 %v549_v3, %v490_v4 }
 0x159   :  { %v567_v11 = vadd.f32 %v752_v5, %v559_v6 }
 0x15b   :  { %v571_v1 = vadd.f32 %v567_v11, %v919_v17 }
 0x15c   :  { %v491_v13 = vpop.f32.mrf.mxu0  ;;  %v554_v22 = vpop.f32.mrf.mxu1 }
 0x15d   :  { %v575_v18 = vmax.f32 %v571_v1, 0.0  ;;  %v492_v14 = vadd.f32 %v491_v13, %v442_v10 }
 0x15e   :  { %v447_v28 = vpop.f32.mrf.mxu3 }
 0x15f   :  { %579 = vst.msk [vmem:[#allocation8] sm:$0xff] %vm205_vm3, %v575_v18  ;;  %v560_v15 = vadd.f32 %v551_v12, %v492_v14 }
 0x161   :  { %v568_v16 = vadd.f32 %v752_v5, %v560_v15 }
 0x163   :  { %v572_v20 = vadd.f32 %v568_v16, %v912_v9 }
 0x164   :  { %v494_v23 = vpop.f32.mrf.mxu0  ;;  %v556_v32 = vpop.f32.mrf.mxu1 }
 0x165   :  { %v576_v24 = vmax.f32 %v572_v20, 0.0  ;;  %v495_v25 = vadd.f32 %v494_v23, %v445_v19 }
 0x167   :  { %580 = vst.msk [vmem:[#allocation8 + $0x8] sm:$0xff] %vm205_vm3, %v576_v24  ;;  %v561_v26 = vadd.f32 %v554_v22, %v495_v25 }
 0x169   :  { %v569_v27 = vadd.f32 %v752_v5, %v561_v26 }
 0x16b   :  { %v573_v17 = vadd.f32 %v569_v27, %v908_v7 }
 0x16c   :  { %v496_v29 = vpop.f32.mrf.mxu0 }
 0x16d   :  { %v577_v30 = vmax.f32 %v573_v17, 0.0  ;;  %v497_v31 = vadd.f32 %v496_v29, %v447_v28 }
 0x16f   :  { %581 = vst.msk [vmem:[#allocation8 + $0x10] sm:$0xff] %vm205_vm3, %v577_v30  ;;  %v562_v33 = vadd.f32 %v556_v32, %v497_v31 }
 0x171   :  { %v570_v34 = vadd.f32 %v752_v5, %v562_v33 }
 0x173   :  { %v574_v9 = vadd.f32 %v570_v34, %v910_v8 }
 0x175   :  { %v578_v35 = vmax.f32 %v574_v9, 0.0 }
 0x177   :  { %582 = vst.msk [vmem:[#allocation8 + $0x18] sm:$0xff] %vm205_vm3, %v578_v35 }
 0x178   :  { %595 = dma.vmem_to_hbm [thread:$0]  %s588_s12, 512, %s590_s15, [#allocation4], %s859_s30, %s859_s30, %s860_s6  }
 0x179   :  { %853 = dma.done.wait [#allocation4], 512  }
 0x17a   :  { %854 = vsyncadd [#allocation4], 4294966784 }
 0x17b   :  { %600 = vsyncpa [#allocation3], 1 }
 0x17c   :  { %601 = vsyncpa [#allocation6], 1 }
 0x17d   :  { %602 = vsyncpa [#allocation4], 1 }

</bundles_post_ra>
